<compile_context>
chip_gen: v5e
topology: v5e:2x2
jax: 0.10.0
libtpu: 0.0.40
codegen_flags: <defaults>
</compile_context>

<pallas_src>
import functools
import math

import jax
import jax.numpy as jnp
from jax import lax
from jax.experimental import pallas as pl
from jax.experimental.pallas import tpu as pltpu


def _att_pool_kernel(x_ref, wqkv_ref, bqkv_ref, gate_ref, o_ref, qkv_ref, *, chunk):
    """One grid step: `batch_tile` graphs -> pooled (batch_tile, H) rows.

    x_ref    : (batch_tile, N, C)   compute dtype (bf16 default, f32 optional)
    wqkv_ref : (C, 3H)              compute dtype, Wq pre-scaled by 1/sqrt(N)
    bqkv_ref : (1, 3H)              f32, bq pre-scaled by 1/sqrt(N)
    gate_ref : (1, N)               f32
    o_ref    : (batch_tile, H)      f32
    qkv_ref  : (batch_tile, N, 3H)  f32 VMEM scratch (live-range boundary)
    """
    bt, n, c = x_ref.shape
    h3 = wqkv_ref.shape[1]
    h = h3 // 3

    # --- Fused QKV projection: ONE MXU matmul for the whole batch tile, ---
    # --- bf16 inputs with f32 accumulation; bias added post-accumulation. ---
    x2 = x_ref[...].reshape(bt * n, c)
    qkv = jnp.dot(x2, wqkv_ref[...], preferred_element_type=jnp.float32)
    qkv_ref[...] = (qkv + bqkv_ref[...]).reshape(bt, n, h3)

    gate_b = gate_ref[...].reshape(1, 1, n)      # broadcast over the lane axis
    score_dtype = x_ref.dtype                    # bf16 (default) or f32

    n_chunks = bt // chunk

    # --- Attention / softmax / gate-pooling, `chunk` samples at a time. ---
    # Staging QKV in VMEM and chunking the softmax phase bounds vreg live
    # ranges: only `chunk` samples' (N, N)/(N, H) tiles are live at once.
    def body(ci, carry):
        i = ci * chunk
        if not isinstance(i, int):
            i = pl.multiple_of(i, chunk)
        qkv_c = qkv_ref[pl.ds(i, chunk), :, :]                 # (chunk, N, 3H) f32
        q = qkv_c[:, :, 0 * h:1 * h].astype(score_dtype)       # pre-scaled by 1/sqrt(N)
        k = qkv_c[:, :, 1 * h:2 * h].astype(score_dtype)
        v = qkv_c[:, :, 2 * h:3 * h]                           # keep f32

        # Flipped scores: s[b, m, j] = K[m]·Q[j] == S_orig[j, m], so torch's
        # softmax(dim=1) becomes a softmax over the last (lane) axis.
        s = jnp.einsum('bmh,bjh->bmj', k, q,
                       preferred_element_type=jnp.float32)     # (chunk, N, N)
        s = s - jnp.max(s, axis=-1, keepdims=True)
        e = jnp.exp(s)
        # Gate folded into the softmax sums (exact reassociation): no (N, N)
        # attention matrix is materialized; exact divide on a (chunk, N, 1).
        num = jnp.sum(e * gate_b, axis=-1, keepdims=True)      # (chunk, N, 1)
        den = jnp.sum(e, axis=-1, keepdims=True)               # (chunk, N, 1)
        w = num / den
        # Reassociated pooling: out[b, h] = sum_m w[b, m] * V[b, m, h].
        o_ref[pl.ds(i, chunk), :] = jnp.sum(w * v, axis=1).astype(o_ref.dtype)
        return carry

    if n_chunks == 1:
        body(0, 0)                         # static offsets, no loop machinery
    else:
        lax.fori_loop(0, n_chunks, body, 0, unroll=False)


def _pick_batch_tile(B, N):
    """Samples per grid step: one step for small B; ~256 MXU rows otherwise."""
    if B <= 8:
        return B                            # single step; splitting tiny B only
                                            # pays the ~0.35us step cost twice.
    target = max(8, -(-256 // N))           # batch_tile*N >= ~256 rows
    best = None
    # Multiple-of-8 divisors of B keep the (batch_tile, H) output block
    # sublane-aligned when the grid has more than one step.
    for t in range(8, min(B, target) + 1, 8):
        if B % t == 0:
            best = t
    return best if best is not None else B  # fall back to one full-batch step


def att_graph_pooling(x, wq, bq, wk, bk, wv, bv, gate, *,
                      batch_tile=None, compute_dtype=jnp.bfloat16):
    """AttGraphPooling forward (agg_type='gate').

    x: (B, N, C).  wq/wk/wv: (C, H) (torch weights pre-transposed).
    bq/bk/bv: (1, H).  gate: (1, N).  Returns (B, H) float32.
    """
    B, N, C = x.shape
    H = wq.shape[1]

    # Fold the 1/sqrt(N) score scale into the Q projection (zero runtime cost),
    # fuse the three projections into one (C, 3H) weight, and cast the MXU
    # inputs once here (bf16 by default).  Biases stay f32 (added after the
    # f32-accumulated matmul).
    scale = 1.0 / math.sqrt(N)
    w_qkv = jnp.concatenate([wq * scale, wk, wv], axis=1).astype(compute_dtype)
    b_qkv = jnp.concatenate([bq * scale, bk, bv], axis=1).astype(jnp.float32)
    x_in = x.astype(compute_dtype)
    gate_in = gate.astype(jnp.float32)

    if batch_tile is None:
        batch_tile = _pick_batch_tile(B, N)
    assert B % batch_tile == 0, (B, batch_tile)
    grid_b = B // batch_tile

    # Softmax/pool sub-chunk: largest divisor of batch_tile that is <= 8
    # (keeps per-chunk vreg pressure well under the 64-vreg file).
    chunk = min(batch_tile, 8)
    while batch_tile % chunk:
        chunk -= 1

    const = lambda shape: pl.BlockSpec(shape, lambda b: (0,) * len(shape))

    return pl.pallas_call(
        functools.partial(_att_pool_kernel, chunk=chunk),
        out_shape=jax.ShapeDtypeStruct((B, H), jnp.float32),
        grid_spec=pltpu.PrefetchScalarGridSpec(
            num_scalar_prefetch=0,
            grid=(grid_b,),
            in_specs=[
                pl.BlockSpec((batch_tile, N, C), lambda b: (b, 0, 0)),  # x tile
                const((C, 3 * H)),                                      # fused W_qkv
                const((1, 3 * H)),                                      # fused b_qkv
                const((1, N)),                                          # gate
            ],
            out_specs=pl.BlockSpec((batch_tile, H), lambda b: (b, 0)),
            scratch_shapes=[pltpu.VMEM((batch_tile, N, 3 * H), jnp.float32)],
        ),
        compiler_params=pltpu.CompilerParams(
            dimension_semantics=("parallel",)),
    )(x_in, w_qkv, b_qkv, gate_in)


def reference(x, wq, bq, wk, bk, wv, bv, gate):
    q = x @ wq + bq                                  # (B, N, H)
    k = x @ wk + bk
    v = x @ wv + bv
    n = x.shape[1]
    att = jnp.einsum('bnh,bmh->bnm', q, k) / (n ** 0.5)
    att = jax.nn.softmax(att, axis=1)                # dim=1, like torch
    y = jnp.einsum('bnm,bmh->bnh', att, v)
    return jnp.einsum('bnh,n->bh', y, gate[0])


if __name__ == "__main__":
    B, N, C, H = 2, 8, 16, 32   # batch, nodes (self.N), in_dim, hid_dim

    key = jax.random.PRNGKey(0)
    kx, kq, kk, kv, kbq, kbk, kbv, kg = jax.random.split(key, 8)

    x = jax.random.normal(kx, (B, N, C), dtype=jnp.float32)

    # kaiming_normal_(fan_in) on torch weight (H, C): std = sqrt(2 / C),
    # stored here pre-transposed as (C, H).
    kaiming_std = math.sqrt(2.0 / C)
    wq = jax.random.normal(kq, (C, H), dtype=jnp.float32) * kaiming_std
    wk = jax.random.normal(kk, (C, H), dtype=jnp.float32) * kaiming_std
    wv = jax.random.normal(kv, (C, H), dtype=jnp.float32) * kaiming_std

    # nn.Linear default bias init: U(-1/sqrt(in_dim), 1/sqrt(in_dim))
    bound = 1.0 / math.sqrt(C)
    bq = jax.random.uniform(kbq, (1, H), jnp.float32, -bound, bound)
    bk = jax.random.uniform(kbk, (1, H), jnp.float32, -bound, bound)
    bv = jax.random.uniform(kbv, (1, H), jnp.float32, -bound, bound)

    # gate: normal(mean=0.01, std=0.01), shape (N,) stored as (1, N)
    gate = 0.01 + 0.01 * jax.random.normal(kg, (1, N), dtype=jnp.float32)

    ref = reference(x, wq, bq, wk, bk, wv, bv, gate)

    # 1) Exact-precision path (compute_dtype=f32): proves the fused-QKV /
    #    flipped-score / gate-folded algorithm matches the reference exactly.
    out_f32 = jax.block_until_ready(
        att_graph_pooling(x, wq, bq, wk, bk, wv, bv, gate,
                          compute_dtype=jnp.float32))
    assert out_f32.shape == (B, H), out_f32.shape
    err32 = jnp.max(jnp.abs(out_f32 - ref))
    assert jnp.allclose(out_f32, ref, atol=1e-4, rtol=1e-4), f"f32 max err {err32}"

    # 2) Default perf path (bf16 MXU inputs, f32 accumulation).  bf16 rounding
    #    of x/W/q/k gives ~1% relative error through the large-logit softmax;
    #    the tolerance documents that deliberate precision/perf tradeoff.
    out = jax.block_until_ready(
        att_graph_pooling(x, wq, bq, wk, bk, wv, bv, gate))
    assert out.shape == (B, H), out.shape
    err16 = jnp.max(jnp.abs(out - ref))
    assert jnp.allclose(out, ref, atol=3e-2, rtol=3e-2), f"bf16 max err {err16}"

    print("KERNEL_OK")
</pallas_src>

<mosaic_0001>
module attributes {stable_mosaic.version = 11 : i64} {
  func.func @_att_pool_kernel(%arg0: i32, %arg1: memref<2x8x16xf32, #tpu.memory_space<vmem>>, %arg2: memref<16x96xf32, #tpu.memory_space<vmem>>, %arg3: memref<1x96xf32, #tpu.memory_space<vmem>>, %arg4: memref<1x8xf32, #tpu.memory_space<vmem>>, %arg5: memref<2x32xf32, #tpu.memory_space<vmem>>, %arg6: memref<2x8x96xf32, #tpu.memory_space<vmem>>) attributes {dimension_semantics = [#tpu.dimension_semantics<parallel>], iteration_bounds = array<i64: 1>, scalar_prefetch = 0 : i64, scratch_operands = 1 : i64, tpu.core_type = #tpu.core_type<tc>, window_params = [{transform_indices = @transform_0, window_bounds = array<i64: 2, 8, 16>}, {pipeline_mode = #tpu.pipeline_mode<synchronous>, transform_indices = @transform_1, window_bounds = array<i64: 16, 96>}, {pipeline_mode = #tpu.pipeline_mode<synchronous>, transform_indices = @transform_2, window_bounds = array<i64: 1, 96>}, {pipeline_mode = #tpu.pipeline_mode<synchronous>, transform_indices = @transform_3, window_bounds = array<i64: 1, 8>}, {transform_indices = @transform_4, window_bounds = array<i64: 2, 32>}]} {
    %c0 = arith.constant 0 : index
    %c0_0 = arith.constant 0 : index
    %c0_1 = arith.constant 0 : index
    %0 = vector.load %arg1[%c0, %c0_0, %c0_1] : memref<2x8x16xf32, #tpu.memory_space<vmem>>, vector<2x8x16xf32>
    %1 = vector.shape_cast %0 : vector<2x8x16xf32> to vector<16x16xf32>
    %c0_2 = arith.constant 0 : index
    %c0_3 = arith.constant 0 : index
    %2 = vector.load %arg2[%c0_2, %c0_3] : memref<16x96xf32, #tpu.memory_space<vmem>>, vector<16x96xf32>
    %cst = arith.constant dense<0.000000e+00> : vector<16x96xf32>
    %3 = tpu.matmul %1, %2, %cst {dimension_numbers = #tpu.dot_dimension_numbers<[1], [0], [0], [1], [0, 0, 1, 1], [], []>} : vector<16x16xf32>, vector<16x96xf32>, vector<16x96xf32> -> vector<16x96xf32>
    %c0_4 = arith.constant 0 : index
    %c0_5 = arith.constant 0 : index
    %4 = vector.load %arg3[%c0_4, %c0_5] : memref<1x96xf32, #tpu.memory_space<vmem>>, vector<1x96xf32>
    %5 = vector.broadcast %4 : vector<1x96xf32> to vector<16x96xf32>
    %6 = arith.addf %3, %5 : vector<16x96xf32>
    %7 = vector.shape_cast %6 : vector<16x96xf32> to vector<2x8x96xf32>
    %c0_6 = arith.constant 0 : index
    %c0_7 = arith.constant 0 : index
    %c0_8 = arith.constant 0 : index
    %8 = vector.load %arg6[%c0_6, %c0_7, %c0_8] : memref<2x8x96xf32, #tpu.memory_space<vmem>>, vector<2x8x96xf32>
    tpu.vector_store %arg6[%c0_6, %c0_7, %c0_8], %7 {strides = array<i32>} : memref<2x8x96xf32, #tpu.memory_space<vmem>>, vector<2x8x96xf32>,
    %c0_9 = arith.constant 0 : index
    %c0_10 = arith.constant 0 : index
    %9 = vector.load %arg4[%c0_9, %c0_10] : memref<1x8xf32, #tpu.memory_space<vmem>>, vector<1x8xf32>
    %10 = vector.shape_cast %9 : vector<1x8xf32> to vector<1x1x8xf32>
    %c0_11 = arith.constant 0 : index
    %c0_12 = arith.constant 0 : index
    %c0_13 = arith.constant 0 : index
    %11 = vector.load %arg6[%c0_11, %c0_12, %c0_13] : memref<2x8x96xf32, #tpu.memory_space<vmem>>, vector<2x8x96xf32>
    %12 = vector.extract_strided_slice %11 {offsets = [0, 0, 0], sizes = [2, 8, 32], strides = [1, 1, 1]} : vector<2x8x96xf32> to vector<2x8x32xf32>
    %13 = vector.extract_strided_slice %11 {offsets = [0, 0, 32], sizes = [2, 8, 32], strides = [1, 1, 1]} : vector<2x8x96xf32> to vector<2x8x32xf32>
    %14 = vector.extract_strided_slice %11 {offsets = [0, 0, 64], sizes = [2, 8, 32], strides = [1, 1, 1]} : vector<2x8x96xf32> to vector<2x8x32xf32>
    "tpu.trace_start"() <{level = 10 : i32, message = "bmh,bjh->bmj"}> : () -> ()
    %cst_14 = arith.constant dense<0.000000e+00> : vector<2x8x8xf32>
    %15 = tpu.matmul %13, %12, %cst_14 {dimension_numbers = #tpu.dot_dimension_numbers<[2], [2], [1], [1], [0, 0, 0, 1, 1, 1], [0], [0]>} : vector<2x8x32xf32>, vector<2x8x32xf32>, vector<2x8x8xf32> -> vector<2x8x8xf32>
    "tpu.trace_stop"() : () -> ()
    %cst_15 = arith.constant dense<0xFF800000> : vector<2x8xf32>
    %16 = vector.multi_reduction <maximumf>, %15, %cst_15 [2] : vector<2x8x8xf32> to vector<2x8xf32>
    %17 = vector.shape_cast %16 : vector<2x8xf32> to vector<2x8x1xf32>
    %18 = vector.broadcast %17 : vector<2x8x1xf32> to vector<2x8x8xf32>
    %19 = arith.subf %15, %18 : vector<2x8x8xf32>
    %20 = math.exp %19 : vector<2x8x8xf32>
    %21 = vector.broadcast %10 : vector<1x1x8xf32> to vector<2x8x8xf32>
    %22 = arith.mulf %20, %21 : vector<2x8x8xf32>
    %cst_16 = arith.constant dense<0.000000e+00> : vector<2x8xf32>
    %23 = vector.multi_reduction <add>, %22, %cst_16 [2] : vector<2x8x8xf32> to vector<2x8xf32>
    %24 = vector.shape_cast %23 : vector<2x8xf32> to vector<2x8x1xf32>
    %cst_17 = arith.constant dense<0.000000e+00> : vector<2x8xf32>
    %25 = vector.multi_reduction <add>, %20, %cst_17 [2] : vector<2x8x8xf32> to vector<2x8xf32>
    %26 = vector.shape_cast %25 : vector<2x8xf32> to vector<2x8x1xf32>
    %27 = arith.divf %24, %26 : vector<2x8x1xf32>
    %28 = vector.broadcast %27 : vector<2x8x1xf32> to vector<2x8x32xf32>
    %29 = arith.mulf %28, %14 : vector<2x8x32xf32>
    %cst_18 = arith.constant dense<0.000000e+00> : vector<2x32xf32>
    %30 = vector.multi_reduction <add>, %29, %cst_18 [1] : vector<2x8x32xf32> to vector<2x32xf32>
    %c0_19 = arith.constant 0 : index
    %c0_20 = arith.constant 0 : index
    %31 = vector.load %arg5[%c0_19, %c0_20] : memref<2x32xf32, #tpu.memory_space<vmem>>, vector<2x32xf32>
    tpu.vector_store %arg5[%c0_19, %c0_20], %30 {strides = array<i32>} : memref<2x32xf32, #tpu.memory_space<vmem>>, vector<2x32xf32>,
    return
  }
  func.func @transform_0(%arg0: i32) -> (i32, i32, i32) {
    %c0_i32 = arith.constant 0 : i32
    %c0_i32_0 = arith.constant 0 : i32
    %c0_i32_1 = arith.constant 0 : i32
    return %arg0, %c0_i32, %c0_i32_0 : i32, i32, i32
  }
  func.func @transform_1(%arg0: i32) -> (i32, i32) {
    %c0_i32 = arith.constant 0 : i32
    %c0_i32_0 = arith.constant 0 : i32
    %c0_i32_1 = arith.constant 0 : i32
    return %c0_i32, %c0_i32_0 : i32, i32
  }
  func.func @transform_2(%arg0: i32) -> (i32, i32) {
    %c0_i32 = arith.constant 0 : i32
    %c0_i32_0 = arith.constant 0 : i32
    %c0_i32_1 = arith.constant 0 : i32
    return %c0_i32, %c0_i32_0 : i32, i32
  }
  func.func @transform_3(%arg0: i32) -> (i32, i32) {
    %c0_i32 = arith.constant 0 : i32
    %c0_i32_0 = arith.constant 0 : i32
    %c0_i32_1 = arith.constant 0 : i32
    return %c0_i32, %c0_i32_0 : i32, i32
  }
  func.func @transform_4(%arg0: i32) -> (i32, i32) {
    %c0_i32 = arith.constant 0 : i32
    %c0_i32_0 = arith.constant 0 : i32
    return %arg0, %c0_i32 : i32, i32
  }
}

</mosaic_0001>

<bundles_post_ra>
// kernel: tpu_custom_call.1
= control target key start
LH: loop header
LB: loop body
LE: loop exit
PB: predicated region body
PF: predicated region fallthrough
CT: control target
= control target key end

     0   :  { %9 = vsyncpa [#allocation4], 0  ;;  %s421_s0 = inlined_call_operand.hbm [shape: f32[2,8,16], index: 0, kind: input, shape index: {}]   ;;  %s422_s1 = inlined_call_operand.hbm [shape: f32[16,96], index: 1, kind: input, shape index: {}]   ;;  %s423_s2 = inlined_call_operand.vmem [shape: f32[1,96], index: 2, kind: input, shape index: {}]   ;;  %s424_s3 = inlined_call_operand.vmem [shape: f32[1,8], index: 3, kind: input, shape index: {}]   ;;  %s425_s4 = inlined_call_operand.hbm [shape: f32[2,32], index: 4, kind: output, shape index: {}]  }
   0x1   :  { %10 = vsyncpa [#allocation7], 0 }
   0x2   :  { %11 = vsyncpa [#allocation5], 0  ;;  %s16_s17 = sshll.u32 %s421_s0, 4  ;;  %s356_s18 = smov [#allocation3]   ;;  %s17_s17 = int_to_ptr.hbm [resolvable:$true] %s16_s17 }
   0x3   :  { %s18_s19 = sshll.u32 %s356_s18, 4  ;;  %s29_s22 = sshll.u32 %s422_s1, 4  ;;  %s19_s19 = int_to_ptr.vmem [resolvable:$true] %s18_s19  ;;  %s30_s22 = int_to_ptr.hbm [resolvable:$true] %s29_s22 }
   0x4   :  { %s357_s23 = smov 128   ;;  %s358_s24 = smov 8  }
   0x5   :  { %24 = dma.hbm_to_vmem [thread:$0]  %s17_s17, 256, %s19_s19, [#allocation4], %s357_s23, %s357_s23, %s358_s24  }
   0x6   :  { %s359_s25 = smov [#allocation6]  }
   0x7   :  { %s31_s26 = sshll.u32 %s359_s25, 4  ;;  %s32_s26 = int_to_ptr.vmem [resolvable:$true] %s31_s26 }
   0x8   :  { %37 = dma.hbm_to_vmem [thread:$0]  %s30_s22, 256, %s32_s26, [#allocation7], %s357_s23, %s357_s23, %s358_s24  }
   0x9   :  { %350 = dma.done.wait [#allocation4], 256  }
   0xa   :  { %351 = vsyncadd [#allocation4], 4294967040 }
   0xb   :  { %352 = dma.done.wait [#allocation7], 256  }
   0xc   :  { %353 = vsyncadd [#allocation7], 4294967040  ;;  %v53_v0 = vld [vmem:[#allocation6 + $0x8] sm:$0xff]  ;;  %v52_v1 = vld [vmem:[#allocation6] sm:$0xff]  ;;  %vm58_vm0 = vcmask 130048   ;;  %vm88_vm1 = vcmask 785408  }
   0xd   :  { %259 = vmatpush.msra.mxu3 %v53_v0  ;;  %v51_v2 = vld [vmem:[#allocation3 + $0x8] sm:$0xff]  ;;  %79 = vmatpush.msra.mxu0 %v53_v0  ;;  %v50_v3 = vld [vmem:[#allocation3] sm:$0xff]  ;;  %v268_v4 = vld [vmem:[%s423_s2] ss:$0 sm:$0xff]  ;;  %vm97_vm2 = vcmask 261120   ;;  %s360_s27 = smov 96  }
   0xe   :  { %vm149_vm3 = vcmask 64512   ;;  %v269_v21 = vld [vmem:[%s424_s3] ss:$0 sm:$0xff]  ;;  %vm211_vm8 = vcmask 785920   ;;  %vm228_vm13 = vcmask 1041409   ;;  %s361_s3 = smov 64  }
   0xf   :  { %260 = vmatpush.msra.mxu3 %v52_v1  ;;  %80 = vmatpush.msra.mxu0 %v52_v1  ;;  %s362_s29 = smov [#allocation8]   ;;  %s242_s7 = sshll.u32 %s425_s4, 4  ;;  %vm233_vm14 = vcmask 254976   ;;  %s243_s7 = int_to_ptr.hbm [resolvable:$true] %s242_s7 }
  0x10   :  { %254 = vmatmul.msk.f32.vlgmr.msra.gmra.mxu3 %vm58_vm0, %v51_v2  ;;  %253 = vmatmul.msk.f32.vlgmr.msra.gmra.mxu0 %vm58_vm0, %v50_v3  ;;  %s240_s30 = sshll.u32 %s362_s29, 4  ;;  %s241_s30 = int_to_ptr.vmem [resolvable:$true] %s240_s30 }
  0x8d   :  { %v82_v5 = vpop.f32.mrf.mxu0 }
  0x8e   :  { %v83_v6 = vadd.f32 %v268_v4, %v82_v5 }
  0x90   :  { %89 = vst.msk [vmem:[#allocation2] sm:$0xff] %vm88_vm1, %v83_v6 }
  0x93   :  { %v85_v7 = vpop.f32.mrf.mxu3 }
  0x94   :  { %v86_v8 = vadd.f32 %v268_v4, %v85_v7 }
  0x96   :  { %90 = vst.msk [vmem:[#allocation2 + $0x8] sm:$0xff] %vm88_vm1, %v86_v8 }
  0x97   :  { %v397_v9 = vld [vmem:[#allocation2] sm:$0xff] }
  0x98   :  { %255 = vmatpush.xpose.msk.msra.mxu1 %vm97_vm2, %v397_v9 }
  0x9d   :  { %v400_v10 = vld [vmem:[#allocation2 + $0x8] sm:$0xff] }
  0x9e   :  { %123 = vrot.lane.b32.xlu0 %v400_v10, %s360_s27  ;;  %257 = vmatpush.xpose.msk.msra.mxu2 %vm97_vm2, %v400_v10 }
  0xa6   :  { %95 = vrot.lane.b32.xlu0 %v397_v9, %s360_s27 }
 0x110   :  { %v124_v11 = vpop.permute.xlu0 %123 }
 0x111   :  { %258 = vmatmul.msk.f32.vlgmr.msra.gmra.mxu2 %vm97_vm2, %v124_v11 }
 0x118   :  { %v96_v12 = vpop.permute.xlu0 %95 }
 0x119   :  { %256 = vmatmul.msk.f32.vlgmr.msra.gmra.mxu1 %vm97_vm2, %v96_v12 }
 0x194   :  { %v146_v15 = vpop.f32.mrf.mxu2 }
 0x195   :  { %v153_v16 = vsel %vm149_vm3, %v146_v15, -inf }
 0x196   :  { %v119_v13 = vpop.f32.mrf.mxu1 }
 0x197   :  { %v150_v14 = vsel %vm149_vm3, %v119_v13, -inf }
 0x198   :  { %151 = vmax.xlane.f32.xlu1 %v150_v14 }
 0x1a0   :  { %154 = vmax.xlane.f32.xlu1 %v153_v16 }
 0x20b   :  { %v152_v17 = vpop.xlane.xlu1 %151 }
 0x20c   :  { %v156_v18 = vsub.f32 %v119_v13, %v152_v17 }
 0x20e   :  { %v158_v19 = vmul.f32 1.442695, %v156_v18 }
 0x210   :  { %270 = vpow2.f32 %v158_v19 }
 0x213   :  { %v155_v20 = vpop.xlane.xlu1 %154 }
 0x214   :  { %v157_v22 = vsub.f32 %v146_v15, %v155_v20 }
 0x216   :  { %v271_v23 = vpop.eup %270  ;;  %v160_v24 = vmul.f32 1.442695, %v157_v22 }
 0x217   :  { %v173_v25 = vsel %vm149_vm3, %v271_v23, 0.0  ;;  %v165_v26 = vmul.f32 %v271_v23, %v269_v21 }
 0x218   :  { %272 = vpow2.f32 %v160_v24  ;;  %174 = vadd.xlane.f32.xlu2 %v173_v25 }
 0x219   :  { %v167_v27 = vsel %vm149_vm3, %v165_v26, 0.0 }
 0x21a   :  { %168 = vadd.xlane.f32.xlu0 %v167_v27 }
 0x21e   :  { %v273_v28 = vpop.eup %272 }
 0x21f   :  { %v176_v29 = vsel %vm149_vm3, %v273_v28, 0.0  ;;  %v166_v30 = vmul.f32 %v273_v28, %v269_v21 }
 0x220   :  { %177 = vadd.xlane.f32.xlu2 %v176_v29 }
 0x221   :  { %v170_v31 = vsel %vm149_vm3, %v166_v30, 0.0 }
 0x222   :  { %171 = vadd.xlane.f32.xlu1 %v170_v31 }
 0x28b   :  { %v175_v32 = vpop.xlane.xlu2 %174 }
 0x28c   :  { %274 = vrcp.f32 %v175_v32  ;;  %v190_v37 = vand.u32 2147483648, %v175_v32  ;;  %v188_v39 = vand.u32 2147483647, %v175_v32  ;;  %vm184_vm5 = vweird.f32 %v175_v32 }
 0x28d   :  { %v169_v46 = vpop.xlane.xlu0 %168 }
 0x28e   :  { %v191_v42 = vor.u32 1.1754944e-38, %v190_v37  ;;  %vm189_vm7 = vcmp.eq.f32.partialorder %v188_v39, 8.507059e+37 }
 0x292   :  { %v275_v33 = vpop.eup %274 }
 0x293   :  { %v180_v34 = vmul.f32 %v275_v33, %v175_v32  ;;  %v178_v35 = vpop.xlane.xlu2 %177  ;;  %vm185_vm4 = vweird.f32 %v275_v33 }
 0x294   :  { %276 = vrcp.f32 %v178_v35  ;;  %vm186_vm6 = vmor %vm184_vm5, %vm185_vm4  ;;  %v205_v49 = vand.u32 2147483648, %v178_v35  ;;  %v203_v52 = vand.u32 2147483647, %v178_v35  ;;  %vm199_vm10 = vweird.f32 %v178_v35 }
 0x295   :  { %v181_v36 = vsub.f32 1.0, %v180_v34  ;;  %v172_v60 = vpop.xlane.xlu1 %171 }
 0x296   :  { %v206_v56 = vor.u32 1.1754944e-38, %v205_v49  ;;  %vm204_vm12 = vcmp.eq.f32.partialorder %v203_v52, 8.507059e+37 }
 0x297   :  { %v182_v38 = vmul.f32 %v275_v33, %v181_v36 }
 0x299   :  { %v183_v40 = vadd.f32 %v275_v33, %v182_v38 }
 0x29a   :  { %v277_v41 = vpop.eup %276 }
 0x29b   :  { %v187_v43 = vsel %vm186_vm6, %v275_v33, %v183_v40  ;;  %v195_v44 = vmul.f32 %v277_v41, %v178_v35  ;;  %vm200_vm9 = vweird.f32 %v277_v41 }
 0x29c   :  { %v192_v45 = vsel %vm189_vm7, %v191_v42, %v187_v43  ;;  %vm201_vm11 = vmor %vm199_vm10, %vm200_vm9 }
 0x29d   :  { %v193_v47 = vmul.f32 %v192_v45, %v169_v46  ;;  %v196_v48 = vsub.f32 1.0, %v195_v44 }
 0x29f   :  { %v209_v50 = vmul.f32 %v193_v47, %v397_v9  ;;  %v197_v51 = vmul.f32 %v277_v41, %v196_v48 }
 0x2a1   :  { %v212_v53 = vsel %vm211_vm8, %v209_v50, 0.0  ;;  %v198_v54 = vadd.f32 %v277_v41, %v197_v51 }
 0x2a2   :  { %v213_v55 = vrot.slane %v212_v53, 4 }
 0x2a3   :  { %v202_v57 = vsel %vm201_vm11, %v277_v41, %v198_v54 }
 0x2a4   :  { %v214_v58 = vadd.f32 %v213_v55, %v212_v53  ;;  %v207_v59 = vsel %vm204_vm12, %v206_v56, %v202_v57 }
 0x2a5   :  { %v208_v61 = vmul.f32 %v207_v59, %v172_v60 }
 0x2a6   :  { %v215_v63 = vrot.slane %v214_v58, 2 }
 0x2a7   :  { %v210_v62 = vmul.f32 %v208_v61, %v400_v10 }
 0x2a8   :  { %v216_v2 = vadd.f32 %v215_v63, %v214_v58 }
 0x2a9   :  { %v219_v0 = vsel %vm211_vm8, %v210_v62, 0.0 }
 0x2aa   :  { %v220_v1 = vrot.slane %v219_v0, 4  ;;  %v217_v6 = vrot.slane %v216_v2, 1 }
 0x2ac   :  { %v221_v3 = vadd.f32 %v220_v1, %v219_v0  ;;  %v218_v8 = vadd.f32 %v217_v6, %v216_v2 }
 0x2ae   :  { %v222_v4 = vrot.slane %v221_v3, 2 }
 0x2b0   :  { %v223_v5 = vadd.f32 %v222_v4, %v221_v3 }
 0x2b2   :  { %v224_v7 = vrot.slane %v223_v5, 1 }
 0x2b4   :  { %v225_v9 = vadd.f32 %v224_v7, %v223_v5 }
 0x2b6   :  { %v229_v11 = vsel %vm228_vm13, %v225_v9, %v218_v8 }
 0x2b7   :  { %230 = vrot.lane.b32.xlu2 %v229_v11, %s361_s3 }
 0x311   :  { %v231_v10 = vpop.permute.xlu2 %230 }
 0x312   :  { %234 = vst.msk [vmem:[#allocation8] sm:$0x3] %vm233_vm14, %v231_v10 }
 0x313   :  { %245 = dma.vmem_to_hbm [thread:$0]  %s241_s30, 32, %s243_s7, [#allocation5]  }
 0x314   :  { %354 = dma.done.wait [#allocation5], 32  }
 0x315   :  { %355 = vsyncadd [#allocation5], 4294967264 }
 0x316   :  { %250 = vsyncpa [#allocation4], 1 }
 0x317   :  { %251 = vsyncpa [#allocation7], 1 }
 0x318   :  { %252 = vsyncpa [#allocation5], 1 }

</bundles_post_ra>
